<compile_context>
chip_gen: v6e
topology: v6e:2x2x1
jax: 0.10.0
libtpu: 0.0.40
codegen_flags: <defaults>
</compile_context>

<pallas_src>
import functools

import jax
import jax.numpy as jnp
from jax import lax
from jax.experimental import pallas as pl
from jax.experimental.pallas import tpu as pltpu

BN_EPS = 1e-5


def _round_up(x, m):
    return ((x + m - 1) // m) * m


def _pick_tile(dim, candidates):
    for c in candidates:
        if dim >= c and dim % c == 0:
            return c
    return dim


# ---------------------------------------------------------------------------
# Pass 1: batch statistics -> folded BN affine (scale, shift), per feature.
# Grid: (F_pad//TK "parallel", B_pad//TB "arbitrary" reduction, last).
# ---------------------------------------------------------------------------
def _bn_stats_kernel(x_ref, gamma_ref, beta_ref, scale_ref, shift_ref,
                     sum_sc, sq_sc, *, true_batch):
    b = pl.program_id(1)

    @pl.when(b == 0)
    def _():
        sum_sc[...] = jnp.zeros_like(sum_sc)
        sq_sc[...] = jnp.zeros_like(sq_sc)

    x = x_ref[...].astype(jnp.float32)
    sum_sc[...] += jnp.sum(x, axis=0, keepdims=True)
    sq_sc[...] += jnp.sum(x * x, axis=0, keepdims=True)

    @pl.when(b == pl.num_programs(1) - 1)
    def _():
        inv_b = jnp.float32(1.0 / true_batch)
        mean = sum_sc[...] * inv_b
        # Biased variance (PyTorch BatchNorm1d training-mode normalization).
        var = jnp.maximum(sq_sc[...] * inv_b - mean * mean, 0.0)
        inv_std = lax.rsqrt(var + BN_EPS)
        scale = gamma_ref[...] * inv_std
        scale_ref[...] = scale
        shift_ref[...] = beta_ref[...] - mean * scale


# ---------------------------------------------------------------------------
# Pass 2: out = x @ (scale^T * M) + shift @ M   (BN folded into the matmul).
# Grid: (B tiles "parallel", C tiles "parallel", F tiles "arbitrary", last).
# bf16 MXU operands, f32 accumulation in VMEM scratch.
# ---------------------------------------------------------------------------
def _etf_matmul_kernel(x_ref, scale_ref, shift_ref, m_ref, o_ref, acc_sc):
    k = pl.program_id(2)

    @pl.when(k == 0)
    def _():
        acc_sc[...] = jnp.zeros_like(acc_sc)

    m = m_ref[...]                                         # (TK, TN) f32
    m_scaled = (m * scale_ref[...]).astype(jnp.bfloat16)   # scale is (TK, 1)
    x_bf = x_ref[...].astype(jnp.bfloat16)                 # (TB, TK)
    acc_sc[...] += jnp.dot(x_bf, m_scaled,
                           preferred_element_type=jnp.float32)
    # Rank-1 BN bias term: (beta - mean*scale) @ M, broadcast over rows.
    acc_sc[...] += jnp.dot(shift_ref[...], m,
                           preferred_element_type=jnp.float32)

    @pl.when(k == pl.num_programs(2) - 1)
    def _():
        o_ref[...] = acc_sc[...].astype(o_ref.dtype)


# ---------------------------------------------------------------------------
# Wrapper
# ---------------------------------------------------------------------------
def etf_classifier_forward(x, gamma, beta, ori_m):
    B, F = x.shape
    F2, C = ori_m.shape
    assert F == F2

    F_pad = _round_up(F, 128)
    C_pad = _round_up(C, 128)
    TB = min(256, _round_up(B, 8))
    B_pad = _round_up(B, TB)
    TK = _pick_tile(F_pad, (512, 256, 128))
    TN = _pick_tile(C_pad, (256, 128))

    # Zero-pad to lane/sublane-aligned shapes (sliced back at the end).
    # x stays in its native dtype (cast to bf16 only inside the kernel).
    x_p = jnp.zeros((B_pad, F_pad), dtype=x.dtype).at[:B, :F].set(x)
    gamma_p = jnp.zeros((1, F_pad), jnp.float32).at[0, :F].set(
        gamma.astype(jnp.float32))
    beta_p = jnp.zeros((1, F_pad), jnp.float32).at[0, :F].set(
        beta.astype(jnp.float32))
    m_p = jnp.zeros((F_pad, C_pad), jnp.float32).at[:F, :C].set(
        ori_m.astype(jnp.float32))

    # --- Pass 1: folded BN affine from batch statistics ---
    scale_row, shift_row = pl.pallas_call(
        functools.partial(_bn_stats_kernel, true_batch=B),
        out_shape=(jax.ShapeDtypeStruct((1, F_pad), jnp.float32),
                   jax.ShapeDtypeStruct((1, F_pad), jnp.float32)),
        grid=(F_pad // TK, B_pad // TB),
        in_specs=[
            pl.BlockSpec((TB, TK), lambda f, b: (b, f)),
            pl.BlockSpec((1, TK), lambda f, b: (0, f)),
            pl.BlockSpec((1, TK), lambda f, b: (0, f)),
        ],
        out_specs=(pl.BlockSpec((1, TK), lambda f, b: (0, f)),
                   pl.BlockSpec((1, TK), lambda f, b: (0, f))),
        scratch_shapes=[pltpu.VMEM((1, TK), jnp.float32),
                        pltpu.VMEM((1, TK), jnp.float32)],
        compiler_params=pltpu.CompilerParams(
            dimension_semantics=("parallel", "arbitrary")),
    )(x_p, gamma_p, beta_p)

    # Layout plumbing only (O(F)): present scale as a column for row-scaling M.
    scale_col = scale_row.reshape(F_pad, 1)

    # --- Pass 2: folded matmul ---
    out_p = pl.pallas_call(
        _etf_matmul_kernel,
        out_shape=jax.ShapeDtypeStruct((B_pad, C_pad), jnp.float32),
        grid=(B_pad // TB, C_pad // TN, F_pad // TK),
        in_specs=[
            pl.BlockSpec((TB, TK), lambda i, j, k: (i, k)),
            pl.BlockSpec((TK, 1), lambda i, j, k: (k, 0)),
            pl.BlockSpec((1, TK), lambda i, j, k: (0, k)),
            pl.BlockSpec((TK, TN), lambda i, j, k: (k, j)),
        ],
        out_specs=pl.BlockSpec((TB, TN), lambda i, j, k: (i, j)),
        scratch_shapes=[pltpu.VMEM((TB, TN), jnp.float32)],
        compiler_params=pltpu.CompilerParams(
            dimension_semantics=("parallel", "parallel", "arbitrary")),
    )(x_p, scale_col, shift_row, m_p)

    return out_p[:B, :C]


# ---------------------------------------------------------------------------
# Module parameter construction + pure-JAX reference
# ---------------------------------------------------------------------------
def make_etf_matrix(key, feat_in, num_classes):
    """sqrt(C/(C-1)) * P @ (I - ones/C), P = QR-orthonormal (feat_in, C)."""
    a = jax.random.uniform(key, (feat_in, num_classes), dtype=jnp.float32)
    P, _ = jnp.linalg.qr(a)
    C = num_classes
    I = jnp.eye(C, dtype=jnp.float32)
    one = jnp.ones((C, C), dtype=jnp.float32)
    M = jnp.sqrt(C / (C - 1.0)) * (P @ (I - one / C))
    return M.astype(jnp.float32)


def reference_forward(x, gamma, beta, ori_m):
    x = x.astype(jnp.float32)
    mean = jnp.mean(x, axis=0, keepdims=True)
    var = jnp.mean((x - mean) ** 2, axis=0, keepdims=True)
    x_hat = (x - mean) * lax.rsqrt(var + BN_EPS)
    x_bn = x_hat * gamma[None, :].astype(jnp.float32) + \
        beta[None, :].astype(jnp.float32)
    return x_bn @ ori_m.astype(jnp.float32)


if __name__ == "__main__":
    key = jax.random.PRNGKey(0)
    k_x, k_m, k_g, k_b = jax.random.split(key, 4)

    batch = 8
    feat_in = 32
    num_classes = 16

    x = jax.random.normal(k_x, (batch, feat_in), dtype=jnp.float32)
    # BatchNorm1d affine params (default init is weight=1, bias=0; perturb
    # slightly to exercise the full folded-BN path).
    gamma = 1.0 + 0.1 * jax.random.normal(k_g, (feat_in,), dtype=jnp.float32)
    beta = 0.05 * jax.random.normal(k_b, (feat_in,), dtype=jnp.float32)
    ori_m = make_etf_matrix(k_m, feat_in, num_classes)

    out = etf_classifier_forward(x, gamma, beta, ori_m)
    out = jax.block_until_ready(out)

    ref = reference_forward(x, gamma, beta, ori_m)
    assert out.shape == (batch, num_classes)
    # bf16 MXU operands with f32 accumulation -> loosened tolerance vs f32 ref.
    max_err = float(jnp.max(jnp.abs(out - ref)))
    assert jnp.allclose(out, ref, atol=5e-2, rtol=5e-2), max_err

    print("KERNEL_OK")
</pallas_src>

<mosaic_0001>
module attributes {stable_mosaic.version = 11 : i64} {
  func.func @_bn_stats_kernel(%arg0: i32, %arg1: i32, %arg2: memref<8x128xf32, #tpu.memory_space<vmem>>, %arg3: memref<1x128xf32, #tpu.memory_space<vmem>>, %arg4: memref<1x128xf32, #tpu.memory_space<vmem>>, %arg5: memref<1x128xf32, #tpu.memory_space<vmem>>, %arg6: memref<1x128xf32, #tpu.memory_space<vmem>>, %arg7: memref<1x128xf32, #tpu.memory_space<vmem>>, %arg8: memref<1x128xf32, #tpu.memory_space<vmem>>) attributes {dimension_semantics = [#tpu.dimension_semantics<parallel>, #tpu.dimension_semantics<arbitrary>], iteration_bounds = array<i64: 1, 1>, scalar_prefetch = 0 : i64, scratch_operands = 2 : i64, tpu.core_type = #tpu.core_type<tc>, window_params = [{transform_indices = @transform_0, window_bounds = array<i64: 8, 128>}, {transform_indices = @transform_1, window_bounds = array<i64: 1, 128>}, {transform_indices = @transform_2, window_bounds = array<i64: 1, 128>}, {transform_indices = @transform_3, window_bounds = array<i64: 1, 128>}, {transform_indices = @transform_4, window_bounds = array<i64: 1, 128>}]} {
    %c0_i32 = arith.constant 0 : i32
    %0 = arith.cmpi eq, %arg1, %c0_i32 : i32
    %1 = arith.extui %0 : i1 to i32
    %c0_i32_0 = arith.constant 0 : i32
    %2 = arith.cmpi ne, %1, %c0_i32_0 : i32
    scf.if %2 {
      %cst_13 = arith.constant 0.000000e+00 : f32
      %18 = vector.broadcast %cst_13 : f32 to vector<1x128xf32>
      %c0_14 = arith.constant 0 : index
      %c0_15 = arith.constant 0 : index
      %19 = vector.load %arg7[%c0_14, %c0_15] : memref<1x128xf32, #tpu.memory_space<vmem>>, vector<1x128xf32>
      tpu.vector_store %arg7[%c0_14, %c0_15], %18 {strides = array<i32>} : memref<1x128xf32, #tpu.memory_space<vmem>>, vector<1x128xf32>,
      %cst_16 = arith.constant 0.000000e+00 : f32
      %20 = vector.broadcast %cst_16 : f32 to vector<1x128xf32>
      %c0_17 = arith.constant 0 : index
      %c0_18 = arith.constant 0 : index
      %21 = vector.load %arg8[%c0_17, %c0_18] : memref<1x128xf32, #tpu.memory_space<vmem>>, vector<1x128xf32>
      tpu.vector_store %arg8[%c0_17, %c0_18], %20 {strides = array<i32>} : memref<1x128xf32, #tpu.memory_space<vmem>>, vector<1x128xf32>,
    } else {
    }
    %c0 = arith.constant 0 : index
    %c0_1 = arith.constant 0 : index
    %3 = vector.load %arg2[%c0, %c0_1] : memref<8x128xf32, #tpu.memory_space<vmem>>, vector<8x128xf32>
    %c0_2 = arith.constant 0 : index
    %c0_3 = arith.constant 0 : index
    %4 = vector.load %arg7[%c0_2, %c0_3] : memref<1x128xf32, #tpu.memory_space<vmem>>, vector<1x128xf32>
    %cst = arith.constant dense<0.000000e+00> : vector<128xf32>
    %5 = vector.multi_reduction <add>, %3, %cst [0] : vector<8x128xf32> to vector<128xf32>
    %6 = vector.shape_cast %5 : vector<128xf32> to vector<1x128xf32>
    %7 = arith.addf %4, %6 : vector<1x128xf32>
    %c0_4 = arith.constant 0 : index
    %c0_5 = arith.constant 0 : index
    %8 = vector.load %arg7[%c0_4, %c0_5] : memref<1x128xf32, #tpu.memory_space<vmem>>, vector<1x128xf32>
    tpu.vector_store %arg7[%c0_4, %c0_5], %7 {strides = array<i32>} : memref<1x128xf32, #tpu.memory_space<vmem>>, vector<1x128xf32>,
    %c0_6 = arith.constant 0 : index
    %c0_7 = arith.constant 0 : index
    %9 = vector.load %arg8[%c0_6, %c0_7] : memref<1x128xf32, #tpu.memory_space<vmem>>, vector<1x128xf32>
    %10 = arith.mulf %3, %3 : vector<8x128xf32>
    %cst_8 = arith.constant dense<0.000000e+00> : vector<128xf32>
    %11 = vector.multi_reduction <add>, %10, %cst_8 [0] : vector<8x128xf32> to vector<128xf32>
    %12 = vector.shape_cast %11 : vector<128xf32> to vector<1x128xf32>
    %13 = arith.addf %9, %12 : vector<1x128xf32>
    %c0_9 = arith.constant 0 : index
    %c0_10 = arith.constant 0 : index
    %14 = vector.load %arg8[%c0_9, %c0_10] : memref<1x128xf32, #tpu.memory_space<vmem>>, vector<1x128xf32>
    tpu.vector_store %arg8[%c0_9, %c0_10], %13 {strides = array<i32>} : memref<1x128xf32, #tpu.memory_space<vmem>>, vector<1x128xf32>,
    %c0_i32_11 = arith.constant 0 : i32
    %15 = arith.cmpi eq, %arg1, %c0_i32_11 : i32
    %16 = arith.extui %15 : i1 to i32
    %c0_i32_12 = arith.constant 0 : i32
    %17 = arith.cmpi ne, %16, %c0_i32_12 : i32
    scf.if %17 {
      %c0_13 = arith.constant 0 : index
      %c0_14 = arith.constant 0 : index
      %18 = vector.load %arg7[%c0_13, %c0_14] : memref<1x128xf32, #tpu.memory_space<vmem>>, vector<1x128xf32>
      %cst_15 = arith.constant 1.250000e-01 : f32
      %19 = vector.broadcast %cst_15 : f32 to vector<1x128xf32>
      %20 = arith.mulf %18, %19 : vector<1x128xf32>
      %c0_16 = arith.constant 0 : index
      %c0_17 = arith.constant 0 : index
      %21 = vector.load %arg8[%c0_16, %c0_17] : memref<1x128xf32, #tpu.memory_space<vmem>>, vector<1x128xf32>
      %cst_18 = arith.constant 1.250000e-01 : f32
      %22 = vector.broadcast %cst_18 : f32 to vector<1x128xf32>
      %23 = arith.mulf %21, %22 : vector<1x128xf32>
      %24 = arith.mulf %20, %20 : vector<1x128xf32>
      %25 = arith.subf %23, %24 : vector<1x128xf32>
      %cst_19 = arith.constant 0.000000e+00 : f32
      %26 = vector.broadcast %cst_19 : f32 to vector<1x128xf32>
      %27 = arith.maximumf %25, %26 : vector<1x128xf32>
      %cst_20 = arith.constant 9.99999974E-6 : f32
      %28 = vector.broadcast %cst_20 : f32 to vector<1x128xf32>
      %29 = arith.addf %27, %28 : vector<1x128xf32>
      %30 = math.rsqrt %29 : vector<1x128xf32>
      %c0_21 = arith.constant 0 : index
      %c0_22 = arith.constant 0 : index
      %31 = vector.load %arg3[%c0_21, %c0_22] : memref<1x128xf32, #tpu.memory_space<vmem>>, vector<1x128xf32>
      %32 = arith.mulf %31, %30 : vector<1x128xf32>
      %c0_23 = arith.constant 0 : index
      %c0_24 = arith.constant 0 : index
      %33 = vector.load %arg5[%c0_23, %c0_24] : memref<1x128xf32, #tpu.memory_space<vmem>>, vector<1x128xf32>
      tpu.vector_store %arg5[%c0_23, %c0_24], %32 {strides = array<i32>} : memref<1x128xf32, #tpu.memory_space<vmem>>, vector<1x128xf32>,
      %c0_25 = arith.constant 0 : index
      %c0_26 = arith.constant 0 : index
      %34 = vector.load %arg4[%c0_25, %c0_26] : memref<1x128xf32, #tpu.memory_space<vmem>>, vector<1x128xf32>
      %35 = arith.mulf %20, %32 : vector<1x128xf32>
      %36 = arith.subf %34, %35 : vector<1x128xf32>
      %c0_27 = arith.constant 0 : index
      %c0_28 = arith.constant 0 : index
      %37 = vector.load %arg6[%c0_27, %c0_28] : memref<1x128xf32, #tpu.memory_space<vmem>>, vector<1x128xf32>
      tpu.vector_store %arg6[%c0_27, %c0_28], %36 {strides = array<i32>} : memref<1x128xf32, #tpu.memory_space<vmem>>, vector<1x128xf32>,
    } else {
    }
    return
  }
  func.func @transform_0(%arg0: i32, %arg1: i32) -> (i32, i32) {
    %c0_i32 = arith.constant 0 : i32
    return %arg1, %arg0 : i32, i32
  }
  func.func @transform_1(%arg0: i32, %arg1: i32) -> (i32, i32) {
    %c0_i32 = arith.constant 0 : i32
    %c0_i32_0 = arith.constant 0 : i32
    return %c0_i32, %arg0 : i32, i32
  }
  func.func @transform_2(%arg0: i32, %arg1: i32) -> (i32, i32) {
    %c0_i32 = arith.constant 0 : i32
    %c0_i32_0 = arith.constant 0 : i32
    return %c0_i32, %arg0 : i32, i32
  }
  func.func @transform_3(%arg0: i32, %arg1: i32) -> (i32, i32) {
    %c0_i32 = arith.constant 0 : i32
    %c0_i32_0 = arith.constant 0 : i32
    return %c0_i32, %arg0 : i32, i32
  }
  func.func @transform_4(%arg0: i32, %arg1: i32) -> (i32, i32) {
    %c0_i32 = arith.constant 0 : i32
    %c0_i32_0 = arith.constant 0 : i32
    return %c0_i32, %arg0 : i32, i32
  }
}

</mosaic_0001>

<bundles_post_ra>
// kernel: tpu_custom_call.1
= control target key start
LH: loop header
LB: loop body
LE: loop exit
PB: predicated region body
PF: predicated region fallthrough
CT: control target
= control target key end

     0   :  { %10 = vsyncpa [#allocation5], 0  ;;  %s220_s0 = inlined_call_operand.hbm [shape: f32[8,128], index: 0, kind: input, shape index: {}]   ;;  %s221_s1 = inlined_call_operand.vmem [shape: f32[1,128], index: 1, kind: input, shape index: {}]   ;;  %s222_s2 = inlined_call_operand.vmem [shape: f32[1,128], index: 2, kind: input, shape index: {}]   ;;  %s223_s3 = inlined_call_operand.hbm [shape: f32[1,128], index: 3, kind: output, shape index: {0}]   ;;  %s224_s4 = inlined_call_operand.hbm [shape: f32[1,128], index: 4, kind: output, shape index: {1}]  }
   0x1   :  { %11 = vsyncpa [#allocation6], 0 }
   0x2   :  { %12 = vsyncpa [#allocation9], 0  ;;  %s176_s15 = smov [#allocation4]  }
   0x3   :  { %s19_s16 = sshll.u32 %s176_s15, 4  ;;  %s20_s16 = int_to_ptr.vmem [resolvable:$true] %s19_s16 }
   0x4   :  { %s118_s17 = scalar_lea.vmem %s20_s16, 128  ;;  %p123_p1 = scmp.lt.s32.totalorder %s20_s16, %s20_s16 }
   0x5   :  { %p119_p0 = scmp.ne.s32.totalorder %s20_s16, %s118_s17  ;;  %p124_p2 = scmp.lt.s32.totalorder %s118_s17, %s118_s17 }
   0x7   :  { %p125_p3 = por %p124_p2, %p123_p1 }
   0x9   :  { %p126_p4 = pnand %p125_p3, %p119_p0 }
   0xb   :  { %129 = shalt.err (!%p126_p4)
}
   0xc   :  { %22 = dma.hbm_to_vmem [thread:$0]  %s220_s0, 128, %s20_s16, [#allocation5]  }
   0xd   :  { %170 = dma.done.wait [#allocation5], 128  }
   0xe   :  { %171 = vsyncadd [#allocation5], 4294967168  ;;  %v177_v0 = vmov 0.0   ;;  %v36_v1 = vld [vmem:[#allocation4] sm:$0xff]  ;;  %v68_v27 = vld [vmem:[%s221_s1] sm:$0x1] }
   0xf   :  { %34 = vst [vmem:[#allocation2] sm:$0x1] %v177_v0  ;;  %35 = vst [vmem:[#allocation3] sm:$0x1] %v177_v0  ;;  %v38_v2 = vrot.slane %v36_v1, 4  ;;  %v47_v3 = vmul.f32 %v36_v1, %v36_v1  ;;  %s178_s21 = smov [#allocation7]  }
  0x10   :  { %s81_s22 = sshll.u32 %s178_s21, 4  ;;  %v71_v30 = vld [vmem:[%s222_s2] sm:$0x1]  ;;  %s179_s25 = smov [#allocation8]   ;;  %s82_s22 = int_to_ptr.vmem [resolvable:$true] %s81_s22 }
  0x11   :  { %v39_v4 = vadd.f32 %v38_v2, %v36_v1  ;;  %v48_v5 = vrot.slane %v47_v3, 4  ;;  %s91_s26 = sshll.u32 %s179_s25, 4  ;;  %s130_s27 = scalar_lea.vmem %s82_s22, 16  ;;  %s92_s26 = int_to_ptr.vmem [resolvable:$true] %s91_s26 }
  0x12   :  { %p131_p5 = scmp.ne.s32.totalorder %s82_s22, %s130_s27  ;;  %s134_s28 = scalar_lea.vmem %s82_s22, 32 }
  0x13   :  { %v40_v6 = vrot.slane %v39_v4, 2  ;;  %v49_v7 = vadd.f32 %v48_v5, %v47_v3  ;;  %p135_p6 = scmp.lt.s32.totalorder %s82_s22, %s82_s22  ;;  %p136_p7 = scmp.lt.s32.totalorder %s134_s28, %s130_s27 }
  0x15   :  { %v41_v8 = vadd.f32 %v40_v6, %v39_v4  ;;  %v50_v9 = vrot.slane %v49_v7, 2  ;;  %p137_p8 = por %p136_p7, %p135_p6 }
  0x16   :  { %v37_v12 = vld [vmem:[#allocation2] sm:$0x1]  ;;  %v46_v15 = vld [vmem:[#allocation3] sm:$0x1] }
  0x17   :  { %v42_v10 = vrot.slane %v41_v8, 1  ;;  %v51_v11 = vadd.f32 %v50_v9, %v49_v7  ;;  %p138_p9 = pnand %p137_p8, %p131_p5 }
  0x19   :  { %v43_v13 = vadd.f32 %v42_v10, %v41_v8  ;;  %v52_v14 = vrot.slane %v51_v11, 1 }
  0x1b   :  { %v44_v16 = vadd.f32 %v43_v13, %v37_v12  ;;  %v53_v17 = vadd.f32 %v52_v14, %v51_v11 }
  0x1d   :  { %45 = vst [vmem:[#allocation2] sm:$0x1] %v44_v16  ;;  %v54_v18 = vadd.f32 %v53_v17, %v46_v15 }
  0x1f   :  { %55 = vst [vmem:[#allocation3] sm:$0x1] %v54_v18 }
  0x24   :  { %v59_v19 = vld [vmem:[#allocation2] sm:$0x1] }
  0x25   :  { %v60_v20 = vmul.f32 0.125, %v59_v19 }
  0x26   :  { %v61_v21 = vld [vmem:[#allocation3] sm:$0x1] }
  0x27   :  { %v62_v22 = vmul.f32 0.125, %v61_v21  ;;  %v63_v23 = vmul.f32 %v60_v20, %v60_v20 }
  0x29   :  { %v64_v24 = vsub.f32 %v62_v22, %v63_v23 }
  0x2b   :  { %v65_v25 = vmax.f32 %v64_v24, 0.0 }
  0x2d   :  { %v66_v26 = vadd.f32 1e-05, %v65_v25 }
  0x2f   :  { %108 = vrsqrt.f32 %v66_v26 }
  0x3c   :  { %v109_v28 = vpop.eup %108 }
  0x3d   :  { %v69_v29 = vmul.f32 %v109_v28, %v68_v27 }
  0x3f   :  { %70 = vst [vmem:[#allocation7] sm:$0x1] %v69_v29  ;;  %v72_v31 = vmul.f32 %v69_v29, %v60_v20 }
  0x40   :  { %141 = shalt.err (!%p138_p9)
}
  0x41   :  { %84 = dma.vmem_to_hbm [thread:$0]  %s82_s22, 16, %s223_s3, [#allocation6]   ;;  %v73_v32 = vsub.f32 %v71_v30, %v72_v31 }
  0x42   :  { %s150_s2 = scalar_lea.vmem %s92_s26, 16  ;;  %s154_s30 = scalar_lea.vmem %s92_s26, 32 }
  0x43   :  { %74 = vst [vmem:[#allocation8] sm:$0x1] %v73_v32  ;;  %p151_p10 = scmp.ne.s32.totalorder %s92_s26, %s150_s2  ;;  %p155_p11 = scmp.lt.s32.totalorder %s92_s26, %s92_s26 }
  0x44   :  { %p156_p12 = scmp.lt.s32.totalorder %s154_s30, %s150_s2 }
  0x46   :  { %p157_p13 = por %p156_p12, %p155_p11 }
  0x48   :  { %p158_p0 = pnand %p157_p13, %p151_p10 }
  0x4a   :  { %161 = shalt.err (!%p158_p0)
}
  0x4b   :  { %94 = dma.vmem_to_hbm [thread:$0]  %s92_s26, 16, %s224_s4, [#allocation9]  }
  0x4c   :  { %172 = dma.done.wait [#allocation6], 16  }
  0x4d   :  { %173 = vsyncadd [#allocation6], 4294967280 }
  0x4e   :  { %174 = dma.done.wait [#allocation9], 16  }
  0x4f   :  { %175 = vsyncadd [#allocation9], 4294967280 }
  0x50   :  { %101 = vsyncpa [#allocation5], 1 }
  0x51   :  { %102 = vsyncpa [#allocation6], 1 }
  0x52   :  { %103 = vsyncpa [#allocation9], 1 }

</bundles_post_ra>
